<compile_context>
chip_gen: v7x
topology: tpu7x:2x2x1
jax: 0.10.0
libtpu: 0.0.40
codegen_flags: <defaults>
</compile_context>

<pallas_src>
import jax
import jax.numpy as jnp
from jax import lax
from jax.experimental import pallas as pl
from jax.experimental.pallas import tpu as pltpu


HIDDEN = 128
STATE = 3
SUB = 128  # inner sub-block rows (v5e-safe; ~16 vregs per live intermediate)


def _cdiv(a, b):
    return (a + b - 1) // b


def _round_up(n, m):
    return _cdiv(n, m) * m


def _mlp_kernel(x_ref, w1_ref, b1_ref, w2_ref, b2_ref, w3_ref, b3_ref, o_ref):
    # Hoist weight/bias loads out of the inner loop (loaded once per grid tile;
    # the blocks themselves are VMEM-resident across the whole grid).
    w1 = w1_ref[...]          # [3, 128]   f32
    b1 = b1_ref[...]          # [1, 128]   f32
    w2 = w2_ref[...]          # [128, 128] bf16
    b2 = b2_ref[...]          # [1, 128]   f32
    w3 = w3_ref[...]          # [128, 3]   bf16
    b3 = b3_ref[...]          # [1, 3]     f32

    def chunk(start, size):
        x = x_ref[pl.ds(start, size), :].astype(jnp.float32)       # [size, 3]

        # Layer 1 (K=3): three VPU broadcast-FMAs (keeps the MXU free).
        z1 = (x[:, 0:1] * w1[0:1, :]
              + x[:, 1:2] * w1[1:2, :]
              + x[:, 2:3] * w1[2:3, :]
              + b1)
        # sigmoid(z) == 0.5*(tanh(0.5*z)+1): single EUP push, no VALU divide.
        h1 = 0.5 * (jnp.tanh(0.5 * z1) + 1.0)                      # [size,128]

        # Layer 2: 128x128 on the MXU, bf16 operands, f32 accumulation.
        z2 = jnp.dot(h1.astype(jnp.bfloat16), w2,
                     preferred_element_type=jnp.float32) + b2
        h2 = 0.5 * (jnp.tanh(0.5 * z2) + 1.0)                      # [size,128]

        # Layer 3 (N=3): bf16 x bf16 MXU dot with f32 acc (avoids multi-pass
        # f32 MXU decomposition), fused output-bias + residual add.
        y = jnp.dot(h2.astype(jnp.bfloat16), w3,
                    preferred_element_type=jnp.float32)             # [size, 3]
        y = y + (x + b3)

        o_ref[pl.ds(start, size), :] = y.astype(o_ref.dtype)

    tb = x_ref.shape[0]
    n_full = tb // SUB
    rem = tb - n_full * SUB

    if n_full > 0:
        def body(i, carry):
            chunk(pl.multiple_of(i * SUB, SUB), SUB)
            return carry
        lax.fori_loop(0, n_full, body, 0, unroll=True)
    if rem > 0:
        chunk(n_full * SUB, rem)


def _dimension_semantics(num_tiles, core_parallel):
    if core_parallel is None:
        try:
            kind = jax.devices()[0].device_kind.lower()
        except Exception:  # pragma: no cover
            kind = ""
        # CORE_PARALLEL only changes codegen on multi-TC chips (v7x); keep the
        # portable "parallel" semantic everywhere else / for single-tile grids.
        core_parallel = ("v7" in kind) and (num_tiles >= 2)
    return (pltpu.CORE_PARALLEL,) if core_parallel else ("parallel",)


def neural_dubins_car_forward(x, params, *, block_b=1024, core_parallel=None):
    """x: [B, 3] float32. params: (in,out)-layout weights, (1,out) biases."""
    B = x.shape[0]
    w1, b1 = params["w1"], params["b1"]
    w2, b2 = params["w2"], params["b2"]
    w3, b3 = params["w3"], params["b3"]

    # Choose the number of tiles first, then a tile size that makes
    # padded_b ~ B (minimal dead rows), rounded up to 8 sublanes.
    ntiles = max(1, _cdiv(B, block_b))
    tb = _round_up(_cdiv(B, ntiles), 8)
    padded_b = tb * ntiles
    if padded_b != B:
        x_in = jnp.zeros((padded_b, STATE), x.dtype).at[:B].set(x)
    else:
        x_in = x

    out = pl.pallas_call(
        _mlp_kernel,
        out_shape=jax.ShapeDtypeStruct((padded_b, STATE), x.dtype),
        grid_spec=pltpu.PrefetchScalarGridSpec(
            num_scalar_prefetch=0,
            grid=(ntiles,),
            in_specs=[
                pl.BlockSpec((tb, STATE),       lambda i: (i, 0)),  # x   (tiled)
                pl.BlockSpec((STATE, HIDDEN),   lambda i: (0, 0)),  # w1  (resident)
                pl.BlockSpec((1, HIDDEN),       lambda i: (0, 0)),  # b1
                pl.BlockSpec((HIDDEN, HIDDEN),  lambda i: (0, 0)),  # w2 (bf16)
                pl.BlockSpec((1, HIDDEN),       lambda i: (0, 0)),  # b2
                pl.BlockSpec((HIDDEN, STATE),   lambda i: (0, 0)),  # w3 (bf16)
                pl.BlockSpec((1, STATE),        lambda i: (0, 0)),  # b3
            ],
            out_specs=pl.BlockSpec((tb, STATE), lambda i: (i, 0)),
        ),
        compiler_params=pltpu.CompilerParams(
            dimension_semantics=_dimension_semantics(ntiles, core_parallel),
        ),
    )(x_in, w1, b1, w2, b2, w3, b3)

    return out[:B]


def init_params(key):
    """PyTorch nn.Linear default init (uniform +-1/sqrt(fan_in)).
    Weights stored pre-transposed as (in, out); biases as (1, out).
    w2 and w3 are stored in bf16; the f32 reference casts them back so kernel
    and reference see identical weight values (only activation casts differ)."""
    def linear(key, fan_in, fan_out):
        kw, kb = jax.random.split(key)
        bound = 1.0 / jnp.sqrt(float(fan_in))
        w = jax.random.uniform(kw, (fan_in, fan_out), jnp.float32, -bound, bound)
        b = jax.random.uniform(kb, (1, fan_out), jnp.float32, -bound, bound)
        return w, b

    k1, k2, k3 = jax.random.split(key, 3)
    w1, b1 = linear(k1, STATE, HIDDEN)
    w2, b2 = linear(k2, HIDDEN, HIDDEN)
    w3, b3 = linear(k3, HIDDEN, STATE)
    return {"w1": w1, "b1": b1,
            "w2": w2.astype(jnp.bfloat16), "b2": b2,
            "w3": w3.astype(jnp.bfloat16), "b3": b3}


def _reference_forward(x, params):
    w2 = params["w2"].astype(jnp.float32)
    w3 = params["w3"].astype(jnp.float32)
    h1 = jax.nn.sigmoid(x @ params["w1"] + params["b1"])
    h2 = jax.nn.sigmoid(h1 @ w2 + params["b2"])
    return h2 @ w3 + params["b3"] + x


if __name__ == "__main__":
    key = jax.random.PRNGKey(0)
    kx, kx2, kx3, kp = jax.random.split(key, 4)
    params = init_params(kp)

    # bf16 operands (f32 accumulate) on the 128x128 and 128x3 layers only;
    # expected deviation from the f32 reference is a few 1e-3.
    atol, rtol = 2e-2, 2e-2

    # 1) Small batch (state = [x, y, theta]); remainder-only inner path.
    B = 8
    x = jax.random.normal(kx, (B, STATE), jnp.float32)
    out = jax.block_until_ready(neural_dubins_car_forward(x, params))
    ref = _reference_forward(x, params)
    assert out.shape == (B, STATE)
    assert jnp.allclose(out, ref, atol=atol, rtol=rtol), float(jnp.abs(out - ref).max())

    # 2) Non-multiple-of-8 batch: pads to 304 rows (2 full 128-row sub-blocks
    #    + 48-row remainder), single grid tile.
    B2 = 300
    x2 = jax.random.normal(kx2, (B2, STATE), jnp.float32)
    out2 = jax.block_until_ready(neural_dubins_car_forward(x2, params))
    ref2 = _reference_forward(x2, params)
    assert out2.shape == (B2, STATE)
    assert jnp.allclose(out2, ref2, atol=atol, rtol=rtol), float(jnp.abs(out2 - ref2).max())

    # 3) Multi-tile grid path (2 tiles of 128 rows), exercises batch pipelining.
    B3 = 256
    x3 = jax.random.normal(kx3, (B3, STATE), jnp.float32)
    out3 = jax.block_until_ready(neural_dubins_car_forward(x3, params, block_b=128))
    ref3 = _reference_forward(x3, params)
    assert out3.shape == (B3, STATE)
    assert jnp.allclose(out3, ref3, atol=atol, rtol=rtol), float(jnp.abs(out3 - ref3).max())

    print("KERNEL_OK")
</pallas_src>

<mosaic_0001>
module attributes {stable_mosaic.version = 11 : i64} {
  func.func @_mlp_kernel(%arg0: i32, %arg1: memref<8x3xf32, #tpu.memory_space<vmem>>, %arg2: memref<3x128xf32, #tpu.memory_space<vmem>>, %arg3: memref<1x128xf32, #tpu.memory_space<vmem>>, %arg4: memref<128x128xbf16, #tpu.memory_space<vmem>>, %arg5: memref<1x128xf32, #tpu.memory_space<vmem>>, %arg6: memref<128x3xbf16, #tpu.memory_space<vmem>>, %arg7: memref<1x3xf32, #tpu.memory_space<vmem>>, %arg8: memref<8x3xf32, #tpu.memory_space<vmem>>) attributes {dimension_semantics = [#tpu.dimension_semantics<parallel>], iteration_bounds = array<i64: 1>, scalar_prefetch = 0 : i64, scratch_operands = 0 : i64, tpu.core_type = #tpu.core_type<tc>, window_params = [{transform_indices = @transform_0, window_bounds = array<i64: 8, 3>}, {pipeline_mode = #tpu.pipeline_mode<synchronous>, transform_indices = @transform_1, window_bounds = array<i64: 3, 128>}, {pipeline_mode = #tpu.pipeline_mode<synchronous>, transform_indices = @transform_2, window_bounds = array<i64: 1, 128>}, {pipeline_mode = #tpu.pipeline_mode<synchronous>, transform_indices = @transform_3, window_bounds = array<i64: 128, 128>}, {pipeline_mode = #tpu.pipeline_mode<synchronous>, transform_indices = @transform_4, window_bounds = array<i64: 1, 128>}, {pipeline_mode = #tpu.pipeline_mode<synchronous>, transform_indices = @transform_5, window_bounds = array<i64: 128, 3>}, {pipeline_mode = #tpu.pipeline_mode<synchronous>, transform_indices = @transform_6, window_bounds = array<i64: 1, 3>}, {transform_indices = @transform_7, window_bounds = array<i64: 8, 3>}]} {
    %c0 = arith.constant 0 : index
    %c0_0 = arith.constant 0 : index
    %0 = vector.load %arg2[%c0, %c0_0] : memref<3x128xf32, #tpu.memory_space<vmem>>, vector<3x128xf32>
    %c0_1 = arith.constant 0 : index
    %c0_2 = arith.constant 0 : index
    %1 = vector.load %arg3[%c0_1, %c0_2] : memref<1x128xf32, #tpu.memory_space<vmem>>, vector<1x128xf32>
    %c0_3 = arith.constant 0 : index
    %c0_4 = arith.constant 0 : index
    %2 = vector.load %arg4[%c0_3, %c0_4] : memref<128x128xbf16, #tpu.memory_space<vmem>>, vector<128x128xbf16>
    %c0_5 = arith.constant 0 : index
    %c0_6 = arith.constant 0 : index
    %3 = vector.load %arg5[%c0_5, %c0_6] : memref<1x128xf32, #tpu.memory_space<vmem>>, vector<1x128xf32>
    %c0_7 = arith.constant 0 : index
    %c0_8 = arith.constant 0 : index
    %4 = vector.load %arg6[%c0_7, %c0_8] : memref<128x3xbf16, #tpu.memory_space<vmem>>, vector<128x3xbf16>
    %c0_9 = arith.constant 0 : index
    %c0_10 = arith.constant 0 : index
    %5 = vector.load %arg7[%c0_9, %c0_10] : memref<1x3xf32, #tpu.memory_space<vmem>>, vector<1x3xf32>
    %c0_11 = arith.constant 0 : index
    %c0_12 = arith.constant 0 : index
    %6 = vector.load %arg1[%c0_11, %c0_12] : memref<8x3xf32, #tpu.memory_space<vmem>>, vector<8x3xf32>
    %7 = vector.extract_strided_slice %6 {offsets = [0, 0], sizes = [8, 1], strides = [1, 1]} : vector<8x3xf32> to vector<8x1xf32>
    %8 = vector.extract_strided_slice %0 {offsets = [0, 0], sizes = [1, 128], strides = [1, 1]} : vector<3x128xf32> to vector<1x128xf32>
    %9 = vector.broadcast %7 : vector<8x1xf32> to vector<8x128xf32>
    %10 = vector.broadcast %8 : vector<1x128xf32> to vector<8x128xf32>
    %11 = arith.mulf %9, %10 : vector<8x128xf32>
    %12 = vector.extract_strided_slice %6 {offsets = [0, 1], sizes = [8, 1], strides = [1, 1]} : vector<8x3xf32> to vector<8x1xf32>
    %13 = vector.extract_strided_slice %0 {offsets = [1, 0], sizes = [1, 128], strides = [1, 1]} : vector<3x128xf32> to vector<1x128xf32>
    %14 = vector.broadcast %12 : vector<8x1xf32> to vector<8x128xf32>
    %15 = vector.broadcast %13 : vector<1x128xf32> to vector<8x128xf32>
    %16 = arith.mulf %14, %15 : vector<8x128xf32>
    %17 = arith.addf %11, %16 : vector<8x128xf32>
    %18 = vector.extract_strided_slice %6 {offsets = [0, 2], sizes = [8, 1], strides = [1, 1]} : vector<8x3xf32> to vector<8x1xf32>
    %19 = vector.extract_strided_slice %0 {offsets = [2, 0], sizes = [1, 128], strides = [1, 1]} : vector<3x128xf32> to vector<1x128xf32>
    %20 = vector.broadcast %18 : vector<8x1xf32> to vector<8x128xf32>
    %21 = vector.broadcast %19 : vector<1x128xf32> to vector<8x128xf32>
    %22 = arith.mulf %20, %21 : vector<8x128xf32>
    %23 = arith.addf %17, %22 : vector<8x128xf32>
    %24 = vector.broadcast %1 : vector<1x128xf32> to vector<8x128xf32>
    %25 = arith.addf %23, %24 : vector<8x128xf32>
    %cst = arith.constant 5.000000e-01 : f32
    %26 = vector.broadcast %cst : f32 to vector<8x128xf32>
    %27 = arith.mulf %26, %25 : vector<8x128xf32>
    %28 = math.tanh %27 : vector<8x128xf32>
    %cst_13 = arith.constant 1.000000e+00 : f32
    %29 = vector.broadcast %cst_13 : f32 to vector<8x128xf32>
    %30 = arith.addf %28, %29 : vector<8x128xf32>
    %cst_14 = arith.constant 5.000000e-01 : f32
    %31 = vector.broadcast %cst_14 : f32 to vector<8x128xf32>
    %32 = arith.mulf %31, %30 : vector<8x128xf32>
    %33 = arith.truncf %32 : vector<8x128xf32> to vector<8x128xbf16>
    %cst_15 = arith.constant dense<0.000000e+00> : vector<8x128xf32>
    %34 = tpu.matmul %33, %2, %cst_15 {dimension_numbers = #tpu.dot_dimension_numbers<[1], [0], [0], [1], [0, 0, 1, 1], [], []>} : vector<8x128xbf16>, vector<128x128xbf16>, vector<8x128xf32> -> vector<8x128xf32>
    %35 = vector.broadcast %3 : vector<1x128xf32> to vector<8x128xf32>
    %36 = arith.addf %34, %35 : vector<8x128xf32>
    %cst_16 = arith.constant 5.000000e-01 : f32
    %37 = vector.broadcast %cst_16 : f32 to vector<8x128xf32>
    %38 = arith.mulf %37, %36 : vector<8x128xf32>
    %39 = math.tanh %38 : vector<8x128xf32>
    %cst_17 = arith.constant 1.000000e+00 : f32
    %40 = vector.broadcast %cst_17 : f32 to vector<8x128xf32>
    %41 = arith.addf %39, %40 : vector<8x128xf32>
    %cst_18 = arith.constant 5.000000e-01 : f32
    %42 = vector.broadcast %cst_18 : f32 to vector<8x128xf32>
    %43 = arith.mulf %42, %41 : vector<8x128xf32>
    %44 = arith.truncf %43 : vector<8x128xf32> to vector<8x128xbf16>
    %cst_19 = arith.constant dense<0.000000e+00> : vector<8x3xf32>
    %45 = tpu.matmul %44, %4, %cst_19 {dimension_numbers = #tpu.dot_dimension_numbers<[1], [0], [0], [1], [0, 0, 1, 1], [], []>} : vector<8x128xbf16>, vector<128x3xbf16>, vector<8x3xf32> -> vector<8x3xf32>
    %46 = vector.broadcast %5 : vector<1x3xf32> to vector<8x3xf32>
    %47 = arith.addf %6, %46 : vector<8x3xf32>
    %48 = arith.addf %45, %47 : vector<8x3xf32>
    %c0_20 = arith.constant 0 : index
    %c0_21 = arith.constant 0 : index
    %49 = vector.load %arg8[%c0_20, %c0_21] : memref<8x3xf32, #tpu.memory_space<vmem>>, vector<8x3xf32>
    tpu.vector_store %arg8[%c0_20, %c0_21], %48 {strides = array<i32>} : memref<8x3xf32, #tpu.memory_space<vmem>>, vector<8x3xf32>,
    return
  }
  func.func @transform_0(%arg0: i32) -> (i32, i32) {
    %c0_i32 = arith.constant 0 : i32
    %c0_i32_0 = arith.constant 0 : i32
    return %arg0, %c0_i32 : i32, i32
  }
  func.func @transform_1(%arg0: i32) -> (i32, i32) {
    %c0_i32 = arith.constant 0 : i32
    %c0_i32_0 = arith.constant 0 : i32
    %c0_i32_1 = arith.constant 0 : i32
    return %c0_i32, %c0_i32_0 : i32, i32
  }
  func.func @transform_2(%arg0: i32) -> (i32, i32) {
    %c0_i32 = arith.constant 0 : i32
    %c0_i32_0 = arith.constant 0 : i32
    %c0_i32_1 = arith.constant 0 : i32
    return %c0_i32, %c0_i32_0 : i32, i32
  }
  func.func @transform_3(%arg0: i32) -> (i32, i32) {
    %c0_i32 = arith.constant 0 : i32
    %c0_i32_0 = arith.constant 0 : i32
    %c0_i32_1 = arith.constant 0 : i32
    return %c0_i32, %c0_i32_0 : i32, i32
  }
  func.func @transform_4(%arg0: i32) -> (i32, i32) {
    %c0_i32 = arith.constant 0 : i32
    %c0_i32_0 = arith.constant 0 : i32
    %c0_i32_1 = arith.constant 0 : i32
    return %c0_i32, %c0_i32_0 : i32, i32
  }
  func.func @transform_5(%arg0: i32) -> (i32, i32) {
    %c0_i32 = arith.constant 0 : i32
    %c0_i32_0 = arith.constant 0 : i32
    %c0_i32_1 = arith.constant 0 : i32
    return %c0_i32, %c0_i32_0 : i32, i32
  }
  func.func @transform_6(%arg0: i32) -> (i32, i32) {
    %c0_i32 = arith.constant 0 : i32
    %c0_i32_0 = arith.constant 0 : i32
    %c0_i32_1 = arith.constant 0 : i32
    return %c0_i32, %c0_i32_0 : i32, i32
  }
  func.func @transform_7(%arg0: i32) -> (i32, i32) {
    %c0_i32 = arith.constant 0 : i32
    %c0_i32_0 = arith.constant 0 : i32
    return %arg0, %c0_i32 : i32, i32
  }
}

</mosaic_0001>

<bundles_post_ra>
// kernel: tpu_custom_call.1
= control target key start
LH: loop header
LB: loop body
LE: loop exit
PB: predicated region body
PF: predicated region fallthrough
CT: control target
= control target key end

     0   :  { %v412_v0 = vmov 0   ;;  %v413_v2 = vmov 2   ;;  %v414_v4 = vmov 0.0   ;;  %v415_v6 = vmov 1   ;;  %s547_s0 = inlined_call_operand.vmem [shape: f32[8,3], index: 0, kind: input, shape index: {}]   ;;  %s548_s3 = inlined_call_operand.vmem [shape: bf16[128,128], index: 3, kind: input, shape index: {}]   ;;  %s549_s5 = inlined_call_operand.vmem [shape: bf16[128,3], index: 5, kind: input, shape index: {}]   ;;  %s550_s1 = inlined_call_operand.vmem [shape: f32[3,128], index: 1, kind: input, shape index: {}]   ;;  %s551_s2 = inlined_call_operand.vmem [shape: f32[1,128], index: 2, kind: input, shape index: {}]   ;;  %s552_s4 = inlined_call_operand.vmem [shape: f32[1,128], index: 4, kind: input, shape index: {}]   ;;  %s553_s6 = inlined_call_operand.vmem [shape: f32[1,3], index: 6, kind: input, shape index: {}]   ;;  %s554_s7 = inlined_call_operand.vmem [shape: f32[8,3], index: 7, kind: output, shape index: {}]  }
   0x1   :  { %388 = vset.pattern.permute.xlu0 %v412_v0  ;;  %v460_v1 = vld [vmem:[%s547_s0] sm:$0xff]  ;;  %390 = vset.pattern.permute.xlu1 %v413_v2  ;;  %v393_v5 = vld [vmem:[%s548_s3 + $0x8] sm:$0xff]   ;;  %v394_v7 = vld [vmem:[%s548_s3 + $0x10] sm:$0xff]   ;;  %vm416_vm0 = vmmov 0   ;;  %v69_v16 = vlaneseq  ;;  %vm300_vm1 = vcmask 23552  }
   0x2   :  { %66 = vperm.xlu0 %388, %v460_v1   ;;  %85 = vperm.xlu1 %390, %v460_v1   ;;  %v392_v3 = vld [vmem:[%s548_s3] sm:$0xff]   ;;  %v395_v8 = vld [vmem:[%s548_s3 + $0x18] sm:$0xff]   ;;  %v397_v10 = vld [vmem:[%s548_s3 + $0x28] sm:$0xff]  }
   0x3   :  { %343 = vmatprep.subr.bf16.mxu0 %v414_v4  ;;  %363 = vmatprep.subr.bf16.mxu1 %v414_v4  ;;  %v396_v9 = vld [vmem:[%s548_s3 + $0x20] sm:$0xff]   ;;  %v398_v11 = vld [vmem:[%s548_s3 + $0x30] sm:$0xff]   ;;  %v399_v12 = vld [vmem:[%s548_s3 + $0x38] sm:$0xff]   ;;  %v70_v17 = vshrl.u32 %v69_v16, 7 }
   0x4   :  { %344 = vmatpush3.bf16.msra.mxu0 %v392_v3  ;;  %359 = vmatprep.mubr.msk.bf16.mxu0 %vm416_vm0, %v414_v4  ;;  %v400_v13 = vld [vmem:[%s549_s5] sm:$0xff]   ;;  %v401_v14 = vld [vmem:[%s549_s5 + $0x8] sm:$0xff]   ;;  %v402_v15 = vld [vmem:[%s549_s5 + $0x10] sm:$0xff]  }
   0x5   :  { %345 = vmatprep.subr.bf16.mxu0 %v414_v4  ;;  %379 = vmatprep.mubr.msk.bf16.mxu1 %vm416_vm0, %v414_v4  ;;  %v71_v18 = vsub.s32 0, %v70_v17  ;;  %v80_v19 = vsub.s32 1, %v70_v17  ;;  %v90_v20 = vsub.s32 2, %v70_v17  ;;  %v27_v21 = vld [vmem:[%s550_s1] sm:$0x7]  ;;  %v403_v40 = vld [vmem:[%s549_s5 + $0x18] sm:$0xff]  }
   0x6   :  { %389 = vset.pattern.permute.xlu0 %v415_v6  ;;  %364 = vmatpush3.bf16.msra.mxu1 %v400_v13  ;;  %v306_v32 = vld [vmem:[%s551_s2] ss:$0 sm:$0xff]  ;;  %v405_v42 = vld [vmem:[%s549_s5 + $0x28] sm:$0xff]   ;;  %v406_v43 = vld [vmem:[%s549_s5 + $0x30] sm:$0xff]  }
   0x7   :  { %75 = vperm.xlu0 %389, %v460_v1   ;;  %365 = vmatprep.subr.bf16.mxu1 %v414_v4  ;;  %v72_v23 = vrot.slane %v27_v21, %v71_v18  ;;  %v81_v24 = vrot.slane %v27_v21, %v80_v19  ;;  %v91_v25 = vrot.slane %v27_v21, %v90_v20  ;;  %v404_v41 = vld [vmem:[%s549_s5 + $0x20] sm:$0xff]   ;;  %v407_v44 = vld [vmem:[%s549_s5 + $0x38] sm:$0xff]  }
   0x8   :  { %346 = vmatpush3.bf16.msra.mxu0 %v393_v5  ;;  %v307_v45 = vld [vmem:[%s552_s4] ss:$0 sm:$0xff] }
   0x9   :  { %347 = vmatprep.subr.bf16.mxu0 %v414_v4  ;;  %v316_v56 = vld [vmem:[%s553_s6] ss:$0 sm:$0xff] }
   0xa   :  { %366 = vmatpush3.bf16.msra.mxu1 %v401_v14  ;;  %v211_v57 = vadd.f32 %v316_v56, %v460_v1 }
   0xb   :  { %391 = vset.pattern.permute.xlu0 %v413_v2  ;;  %367 = vmatprep.subr.bf16.mxu1 %v414_v4 }
   0xc   :  { %348 = vmatpush3.bf16.msra.mxu0 %v394_v7 }
   0xd   :  { %349 = vmatprep.subr.bf16.mxu0 %v414_v4 }
   0xe   :  { %368 = vmatpush3.bf16.msra.mxu1 %v402_v15 }
   0xf   :  { %369 = vmatprep.subr.bf16.mxu1 %v414_v4 }
  0x10   :  { %350 = vmatpush3.bf16.msra.mxu0 %v395_v8 }
  0x11   :  { %351 = vmatprep.subr.bf16.mxu0 %v414_v4 }
  0x12   :  { %370 = vmatpush3.bf16.msra.mxu1 %v403_v40 }
  0x13   :  { %371 = vmatprep.subr.bf16.mxu1 %v414_v4 }
  0x14   :  { %352 = vmatpush3.bf16.msra.mxu0 %v396_v9 }
  0x15   :  { %353 = vmatprep.subr.bf16.mxu0 %v414_v4 }
  0x16   :  { %372 = vmatpush3.bf16.msra.mxu1 %v404_v41 }
  0x17   :  { %373 = vmatprep.subr.bf16.mxu1 %v414_v4 }
  0x18   :  { %354 = vmatpush3.bf16.msra.mxu0 %v397_v10 }
  0x19   :  { %355 = vmatprep.subr.bf16.mxu0 %v414_v4 }
  0x1a   :  { %374 = vmatpush3.bf16.msra.mxu1 %v405_v42 }
  0x1b   :  { %375 = vmatprep.subr.bf16.mxu1 %v414_v4 }
  0x1c   :  { %356 = vmatpush3.bf16.msra.mxu0 %v398_v11 }
  0x1d   :  { %357 = vmatprep.subr.bf16.mxu0 %v414_v4 }
  0x1e   :  { %376 = vmatpush3.bf16.msra.mxu1 %v406_v43 }
  0x1f   :  { %377 = vmatprep.subr.bf16.mxu1 %v414_v4 }
  0x20   :  { %358 = vmatpush3.bf16.msra.mxu0 %v399_v12 }
  0x22   :  { %378 = vmatpush3.bf16.msra.mxu1 %v407_v44 }
  0x81   :  { %v67_v22 = vpop.permute.xlu0 %66  ;;  %v86_v26 = vpop.permute.xlu1 %85 }
  0x82   :  { %v73_v28 = vmul.f32 %v72_v23, %v67_v22  ;;  %v92_v30 = vmul.f32 %v91_v25, %v86_v26 }
  0x86   :  { %v76_v27 = vpop.permute.xlu0 %75 }
  0x87   :  { %v82_v29 = vmul.f32 %v81_v24, %v76_v27 }
  0x89   :  { %v83_v31 = vadd.f32 %v82_v29, %v73_v28 }
  0x8b   :  { %v93_v33 = vadd.f32 %v92_v30, %v83_v31 }
  0x8d   :  { %v100_v34 = vadd.f32 %v306_v32, %v93_v33 }
  0x8f   :  { %v101_v35 = vmul.f32 0.5, %v100_v34 }
  0x91   :  { %408 = vtanh.f32 %v101_v35 }
  0x9b   :  { %v409_v36 = vpop.eup %408 }
  0x9c   :  { %v103_v37 = vadd.f32 1.0, %v409_v36 }
  0x9e   :  { %v104_v38 = vmul.f32 0.5, %v103_v37 }
  0xa0   :  { %v105_v39 = vpack.c.bf16 %v104_v38, %v104_v38 }
  0xa2   :  { %360 = vmatmul.mubr.bf16.vlgmr.msra.gmra.mrb[0].mxu0 %v105_v39 }
 0x175   :  { %v194_v46 = vpop.f32.mrb[0].mxu0 }
 0x176   :  { %v195_v47 = vadd.f32 %v307_v45, %v194_v46  ;;  %v361_v48 = vpop.f32.mrb[1].mxu0 }
 0x177   :  { %v197_v49 = vpop.f32.mrb[2].mxu0 }
 0x178   :  { %v200_v50 = vmul.f32 0.5, %v195_v47  ;;  %v362_v51 = vpop.f32.mrb[3].mxu0 }
 0x17a   :  { %410 = vtanh.f32 %v200_v50 }
 0x184   :  { %v411_v52 = vpop.eup %410 }
 0x185   :  { %v202_v53 = vadd.f32 1.0, %v411_v52 }
 0x187   :  { %v203_v54 = vmul.f32 0.5, %v202_v53 }
 0x189   :  { %v204_v55 = vpack.c.bf16 %v203_v54, %v203_v54 }
 0x18b   :  { %380 = vmatmul.mubr.bf16.vlgmr.msra.gmra.mrb[0].mxu1 %v204_v55 }
 0x25e   :  { %v294_v58 = vpop.f32.mrb[0].mxu1 }
 0x25f   :  { %v295_v59 = vadd.f32 %v294_v58, %v211_v57  ;;  %v381_v60 = vpop.f32.mrb[1].mxu1 }
 0x260   :  { %v297_v61 = vpop.f32.mrb[2].mxu1 }
 0x261   :  { %301 = vst.msk [vmem:[%s554_s7] sm:$0xff] %vm300_vm1, %v295_v59  ;;  %v382_v62 = vpop.f32.mrb[3].mxu1 }

</bundles_post_ra>
